<compile_context>
chip_gen: v7x
topology: tpu7x:2x2x1
jax: 0.10.0
libtpu: 0.0.40
codegen_flags: <defaults>
</compile_context>

<pallas_src>
import jax
import jax.numpy as jnp
from jax.experimental import pallas as pl
from jax.experimental.pallas import tpu as pltpu

_SUBLANE = 8


def _round_up(x, m):
    return ((x + m - 1) // m) * m


# ----------------------------------------------------------------------------
# Kernel: h = relu(h @ W_l + b_l) for l < L, last layer without ReLU.
# Ref order: x_ref, W1, b1, ..., WL, bL, out_ref.
# ----------------------------------------------------------------------------

def _make_mlp_kernel(num_layers, compute_dtype):
    def kernel(x_ref, *rest):
        out_ref = rest[-1]
        param_refs = rest[:-1]
        h = x_ref[...]                          # f32 row tile (cast per layer below)
        for l in range(num_layers):
            w = param_refs[2 * l][...]          # (d_in, d_out) compute_dtype
            b = param_refs[2 * l + 1][...]      # (1, d_out) f32
            acc = jnp.dot(h.astype(compute_dtype), w,
                          preferred_element_type=jnp.float32) + b
            h = acc if l == num_layers - 1 else jnp.maximum(acc, 0.0)
        out_ref[...] = h.astype(out_ref.dtype)
    return kernel


# ----------------------------------------------------------------------------
# Row-tiled MLP wrapper (one pallas_call per MLP).
# ----------------------------------------------------------------------------

def mlp_pallas(x, weights_c, biases_c, *, tm=1024,
               compute_dtype=jnp.bfloat16, out_dtype=None):
    """Apply an MLP (Linear -> ReLU -> ... -> Linear) over rows of x.

    x:         [n, d_in] float array (any float dtype; cast happens in-kernel).
    weights_c: list of [d_in_l, d_out_l] arrays, already in compute_dtype.
    biases_c:  list of [1, d_out_l] float32 arrays.
    Returns:   [n, d_out_L] array in out_dtype (defaults to compute_dtype).
    """
    n, d_in = int(x.shape[0]), int(x.shape[1])
    L = len(weights_c)
    assert L >= 1
    d_out = int(weights_c[-1].shape[1])
    out_dtype = compute_dtype if out_dtype is None else out_dtype

    # Row tile: large for big graphs, clamped so tiny graphs aren't padded up.
    tm_eff = max(_SUBLANE, min(int(tm), _round_up(n, _SUBLANE)))
    grid = (pl.cdiv(n, tm_eff),)

    in_specs = [pl.BlockSpec((tm_eff, d_in), lambda i: (i, 0))]
    flat_params = []
    for w, b in zip(weights_c, biases_c):
        flat_params.append(w)
        flat_params.append(b)
        # Constant index maps -> weights/biases stay VMEM-resident across the grid.
        in_specs.append(pl.BlockSpec(tuple(int(s) for s in w.shape),
                                     lambda i: (0, 0)))
        in_specs.append(pl.BlockSpec(tuple(int(s) for s in b.shape),
                                     lambda i: (0, 0)))
    out_spec = pl.BlockSpec((tm_eff, d_out), lambda i: (i, 0))

    dims = [d_in] + [int(w.shape[1]) for w in weights_c]
    flops = 2 * n * sum(dims[l] * dims[l + 1] for l in range(L))
    w_bytes = sum(int(w.size) * jnp.dtype(w.dtype).itemsize for w in weights_c)
    b_bytes = sum(int(b.size) * 4 for b in biases_c)
    bytes_accessed = (n * d_in * jnp.dtype(x.dtype).itemsize + w_bytes + b_bytes
                      + n * d_out * jnp.dtype(out_dtype).itemsize)

    return pl.pallas_call(
        _make_mlp_kernel(L, compute_dtype),
        out_shape=jax.ShapeDtypeStruct((n, d_out), out_dtype),
        grid=grid,
        in_specs=in_specs,
        out_specs=out_spec,
        compiler_params=pltpu.CompilerParams(
            dimension_semantics=("parallel",),
            vmem_limit_bytes=32 << 20),
        cost_estimate=pl.CostEstimate(
            flops=int(flops), transcendentals=0,
            bytes_accessed=int(bytes_accessed)),
    )(x, *flat_params)


# ----------------------------------------------------------------------------
# GraphEncoder: parameter construction (with hoisted kernel-side prep) + forward.
# ----------------------------------------------------------------------------

def _init_linear(key, in_dim, out_dim):
    """Mirrors torch.nn.Linear default init (uniform +-1/sqrt(in_dim))."""
    kw, kb = jax.random.split(key)
    bound = 1.0 / jnp.sqrt(jnp.float32(in_dim))
    w = jax.random.uniform(kw, (in_dim, out_dim), jnp.float32, -bound, bound)
    b = jax.random.uniform(kb, (out_dim,), jnp.float32, -bound, bound)
    return w, b


def _prep_mlp_params(weights, biases, compute_dtype):
    """One-time prep hoisted out of forward: cast weights to the MXU compute
    dtype and reshape biases to (1, d_out) f32."""
    w_c = [w.astype(compute_dtype) for w in weights]
    b_c = [b.astype(jnp.float32).reshape(1, -1) for b in biases]
    return w_c, b_c


def init_graph_encoder_params(key, node_feature_dim, edge_feature_dim,
                              node_hidden_sizes, edge_hidden_sizes,
                              compute_dtype=jnp.bfloat16):
    params = {"node": None, "edge": None}

    def build(feat_dim, hidden_sizes, key):
        ws, bs = [], []
        dims = [feat_dim] + list(hidden_sizes)
        for i in range(len(hidden_sizes)):
            key, sub = jax.random.split(key)
            w, b = _init_linear(sub, dims[i], dims[i + 1])
            ws.append(w)
            bs.append(b)
        w_c, b_c = _prep_mlp_params(ws, bs, compute_dtype)
        return {"w": ws, "b": bs, "w_c": w_c, "b_c": b_c}, key

    if node_hidden_sizes is not None:
        params["node"], key = build(node_feature_dim, node_hidden_sizes, key)
    if edge_hidden_sizes is not None:
        params["edge"], key = build(edge_feature_dim, edge_hidden_sizes, key)
    return params


def graph_encoder_forward(params, node_features, edge_features=None, *,
                          tm=1024, compute_dtype=jnp.bfloat16, out_dtype=None):
    """Matches GraphEncoder.forward semantics: MLP over nodes (if configured),
    MLP over edges (if configured and edge_features given), else pass-through."""
    node_p = params.get("node")
    edge_p = params.get("edge")

    node_out = node_features
    if node_p is not None:
        node_out = mlp_pallas(node_features, node_p["w_c"], node_p["b_c"],
                              tm=tm, compute_dtype=compute_dtype,
                              out_dtype=out_dtype)

    edge_out = edge_features
    if edge_features is not None and edge_p is not None:
        edge_out = mlp_pallas(edge_features, edge_p["w_c"], edge_p["b_c"],
                              tm=tm, compute_dtype=compute_dtype,
                              out_dtype=out_dtype)
    return node_out, edge_out


# ----------------------------------------------------------------------------
# Reference (pure JAX, f32) for correctness check.
# ----------------------------------------------------------------------------

def _mlp_ref(x, weights, biases):
    h = x
    for i, (w, b) in enumerate(zip(weights, biases)):
        h = h @ w + b
        if i < len(weights) - 1:
            h = jnp.maximum(h, 0.0)
    return h


if __name__ == "__main__":
    key = jax.random.PRNGKey(0)

    # Small, module-consistent shapes.
    n_nodes, node_feat_dim = 8, 16
    n_edges, edge_feat_dim = 16, 8
    node_hidden_sizes = [32, 32]   # last entry = node embedding dim
    edge_hidden_sizes = [32, 32]   # last entry = edge embedding dim

    key, k_params, k_nodes, k_edges, k_tail = jax.random.split(key, 5)
    params = init_graph_encoder_params(
        k_params, node_feat_dim, edge_feat_dim,
        node_hidden_sizes, edge_hidden_sizes)

    node_features = jax.random.normal(k_nodes, (n_nodes, node_feat_dim), jnp.float32)
    edge_features = jax.random.normal(k_edges, (n_edges, edge_feat_dim), jnp.float32)

    node_out, edge_out = graph_encoder_forward(params, node_features, edge_features)
    node_out = jax.block_until_ready(node_out)
    edge_out = jax.block_until_ready(edge_out)

    # Correctness vs plain-JAX f32 reference (bf16 MXU + bf16 output -> loose tol).
    node_ref = _mlp_ref(node_features, params["node"]["w"], params["node"]["b"])
    edge_ref = _mlp_ref(edge_features, params["edge"]["w"], params["edge"]["b"])
    assert node_out.shape == (n_nodes, node_hidden_sizes[-1])
    assert edge_out.shape == (n_edges, edge_hidden_sizes[-1])
    assert jnp.allclose(node_out.astype(jnp.float32), node_ref,
                        atol=5e-2, rtol=5e-2), (
        float(jnp.max(jnp.abs(node_out.astype(jnp.float32) - node_ref))))
    assert jnp.allclose(edge_out.astype(jnp.float32), edge_ref,
                        atol=5e-2, rtol=5e-2), (
        float(jnp.max(jnp.abs(edge_out.astype(jnp.float32) - edge_ref))))

    # Tail-block check: row count not a multiple of the tile (exercises the
    # cdiv grid + masked partial-block writeback path).
    n_tail = 13
    x_tail = jax.random.normal(k_tail, (n_tail, node_feat_dim), jnp.float32)
    tail_out, _ = graph_encoder_forward(params, x_tail, None, tm=8)
    tail_out = jax.block_until_ready(tail_out)
    tail_ref = _mlp_ref(x_tail, params["node"]["w"], params["node"]["b"])
    assert tail_out.shape == (n_tail, node_hidden_sizes[-1])
    assert jnp.allclose(tail_out.astype(jnp.float32), tail_ref,
                        atol=5e-2, rtol=5e-2), (
        float(jnp.max(jnp.abs(tail_out.astype(jnp.float32) - tail_ref))))

    print("KERNEL_OK")
</pallas_src>

<mosaic_0001>
module attributes {stable_mosaic.version = 11 : i64} {
  func.func @kernel(%arg0: i32, %arg1: memref<8x16xf32, #tpu.memory_space<vmem>>, %arg2: memref<16x32xbf16, #tpu.memory_space<vmem>>, %arg3: memref<1x32xf32, #tpu.memory_space<vmem>>, %arg4: memref<32x32xbf16, #tpu.memory_space<vmem>>, %arg5: memref<1x32xf32, #tpu.memory_space<vmem>>, %arg6: memref<8x32xbf16, #tpu.memory_space<vmem>>) attributes {dimension_semantics = [#tpu.dimension_semantics<parallel>], iteration_bounds = array<i64: 1>, scalar_prefetch = 0 : i64, scratch_operands = 0 : i64, tpu.core_type = #tpu.core_type<tc>, window_params = [{transform_indices = @transform_0, window_bounds = array<i64: 8, 16>}, {pipeline_mode = #tpu.pipeline_mode<synchronous>, transform_indices = @transform_1, window_bounds = array<i64: 16, 32>}, {pipeline_mode = #tpu.pipeline_mode<synchronous>, transform_indices = @transform_2, window_bounds = array<i64: 1, 32>}, {pipeline_mode = #tpu.pipeline_mode<synchronous>, transform_indices = @transform_3, window_bounds = array<i64: 32, 32>}, {pipeline_mode = #tpu.pipeline_mode<synchronous>, transform_indices = @transform_4, window_bounds = array<i64: 1, 32>}, {transform_indices = @transform_5, window_bounds = array<i64: 8, 32>}]} {
    %c0 = arith.constant 0 : index
    %c0_0 = arith.constant 0 : index
    %0 = vector.load %arg1[%c0, %c0_0] : memref<8x16xf32, #tpu.memory_space<vmem>>, vector<8x16xf32>
    %c0_1 = arith.constant 0 : index
    %c0_2 = arith.constant 0 : index
    %1 = vector.load %arg2[%c0_1, %c0_2] : memref<16x32xbf16, #tpu.memory_space<vmem>>, vector<16x32xbf16>
    %c0_3 = arith.constant 0 : index
    %c0_4 = arith.constant 0 : index
    %2 = vector.load %arg3[%c0_3, %c0_4] : memref<1x32xf32, #tpu.memory_space<vmem>>, vector<1x32xf32>
    %3 = arith.truncf %0 : vector<8x16xf32> to vector<8x16xbf16>
    %cst = arith.constant dense<0.000000e+00> : vector<8x32xf32>
    %4 = tpu.matmul %3, %1, %cst {dimension_numbers = #tpu.dot_dimension_numbers<[1], [0], [0], [1], [0, 0, 1, 1], [], []>} : vector<8x16xbf16>, vector<16x32xbf16>, vector<8x32xf32> -> vector<8x32xf32>
    %5 = vector.broadcast %2 : vector<1x32xf32> to vector<8x32xf32>
    %6 = arith.addf %4, %5 : vector<8x32xf32>
    %cst_5 = arith.constant 0.000000e+00 : f32
    %7 = vector.broadcast %cst_5 : f32 to vector<8x32xf32>
    %8 = arith.maximumf %6, %7 : vector<8x32xf32>
    %c0_6 = arith.constant 0 : index
    %c0_7 = arith.constant 0 : index
    %9 = vector.load %arg4[%c0_6, %c0_7] : memref<32x32xbf16, #tpu.memory_space<vmem>>, vector<32x32xbf16>
    %c0_8 = arith.constant 0 : index
    %c0_9 = arith.constant 0 : index
    %10 = vector.load %arg5[%c0_8, %c0_9] : memref<1x32xf32, #tpu.memory_space<vmem>>, vector<1x32xf32>
    %11 = arith.truncf %8 : vector<8x32xf32> to vector<8x32xbf16>
    %cst_10 = arith.constant dense<0.000000e+00> : vector<8x32xf32>
    %12 = tpu.matmul %11, %9, %cst_10 {dimension_numbers = #tpu.dot_dimension_numbers<[1], [0], [0], [1], [0, 0, 1, 1], [], []>} : vector<8x32xbf16>, vector<32x32xbf16>, vector<8x32xf32> -> vector<8x32xf32>
    %13 = vector.broadcast %10 : vector<1x32xf32> to vector<8x32xf32>
    %14 = arith.addf %12, %13 : vector<8x32xf32>
    %15 = arith.truncf %14 : vector<8x32xf32> to vector<8x32xbf16>
    %c0_11 = arith.constant 0 : index
    %c0_12 = arith.constant 0 : index
    %16 = vector.load %arg6[%c0_11, %c0_12] : memref<8x32xbf16, #tpu.memory_space<vmem>>, vector<8x32xbf16>
    tpu.vector_store %arg6[%c0_11, %c0_12], %15 {strides = array<i32>} : memref<8x32xbf16, #tpu.memory_space<vmem>>, vector<8x32xbf16>,
    return
  }
  func.func @transform_0(%arg0: i32) -> (i32, i32) {
    %c0_i32 = arith.constant 0 : i32
    %c0_i32_0 = arith.constant 0 : i32
    return %arg0, %c0_i32 : i32, i32
  }
  func.func @transform_1(%arg0: i32) -> (i32, i32) {
    %c0_i32 = arith.constant 0 : i32
    %c0_i32_0 = arith.constant 0 : i32
    %c0_i32_1 = arith.constant 0 : i32
    return %c0_i32, %c0_i32_0 : i32, i32
  }
  func.func @transform_2(%arg0: i32) -> (i32, i32) {
    %c0_i32 = arith.constant 0 : i32
    %c0_i32_0 = arith.constant 0 : i32
    %c0_i32_1 = arith.constant 0 : i32
    return %c0_i32, %c0_i32_0 : i32, i32
  }
  func.func @transform_3(%arg0: i32) -> (i32, i32) {
    %c0_i32 = arith.constant 0 : i32
    %c0_i32_0 = arith.constant 0 : i32
    %c0_i32_1 = arith.constant 0 : i32
    return %c0_i32, %c0_i32_0 : i32, i32
  }
  func.func @transform_4(%arg0: i32) -> (i32, i32) {
    %c0_i32 = arith.constant 0 : i32
    %c0_i32_0 = arith.constant 0 : i32
    %c0_i32_1 = arith.constant 0 : i32
    return %c0_i32, %c0_i32_0 : i32, i32
  }
  func.func @transform_5(%arg0: i32) -> (i32, i32) {
    %c0_i32 = arith.constant 0 : i32
    %c0_i32_0 = arith.constant 0 : i32
    return %arg0, %c0_i32 : i32, i32
  }
}

</mosaic_0001>

<bundles_post_ra>
// kernel: tpu_custom_call.1
= control target key start
LH: loop header
LB: loop body
LE: loop exit
PB: predicated region body
PF: predicated region fallthrough
CT: control target
= control target key end

     0   :  { %10 = vsyncpa [#allocation3], 0  ;;  %s439_s0 = inlined_call_operand.hbm [shape: f32[8,16], index: 0, kind: input, shape index: {}]   ;;  %s440_s1 = inlined_call_operand.hbm [shape: bf16[16,32], index: 1, kind: input, shape index: {}]   ;;  %s441_s2 = inlined_call_operand.vmem [shape: f32[1,32], index: 2, kind: input, shape index: {}]   ;;  %s442_s3 = inlined_call_operand.hbm [shape: bf16[32,32], index: 3, kind: input, shape index: {}]   ;;  %s443_s4 = inlined_call_operand.vmem [shape: f32[1,32], index: 4, kind: input, shape index: {}]   ;;  %s444_s5 = inlined_call_operand.hbm [shape: bf16[8,32], index: 5, kind: output, shape index: {}]  }
   0x1   :  { %11 = vsyncpa [#allocation6], 0 }
   0x2   :  { %12 = vsyncpa [#allocation4], 0  ;;  %s341_s18 = smov [#allocation5]   ;;  %s247_s22 = scalar_lea.hbm %s440_s1, 128 }
   0x3   :  { %s28_s19 = sshll.u32 %s341_s18, 4  ;;  %p248_p0 = scmp.ne.s32.totalorder %s440_s1, %s247_s22  ;;  %s29_s19 = int_to_ptr.vmem [resolvable:$true] %s28_s19 }
   0x4   :  { %p251_p1 = scmp.lt.u32.totalorder %s247_s22, %s440_s1 }
   0x6   :  { %p253_p2 = pnand %p251_p1, %p248_p0 }
   0x8   :  { %256 = shalt.err (!%p253_p2)
}
   0x9   :  { %s257_s27 = scalar_lea.vmem %s29_s19, 128  ;;  %p262_p4 = scmp.lt.s32.totalorder %s29_s19, %s29_s19 }
   0xa   :  { %p258_p3 = scmp.ne.s32.totalorder %s29_s19, %s257_s27  ;;  %p263_p5 = scmp.lt.s32.totalorder %s257_s27, %s257_s27 }
   0xc   :  { %p264_p6 = por %p263_p5, %p262_p4 }
   0xe   :  { %p265_p7 = pnand %p264_p6, %p258_p3 }
  0x10   :  { %268 = shalt.err (!%p265_p7)
}
  0x11   :  { %s342_s28 = smov 64   ;;  %s343_s29 = smov 4  }
  0x12   :  { %34 = dma.hbm_to_vmem [thread:$0]  %s440_s1, 128, %s29_s19, [#allocation6], %s342_s28, %s342_s28, %s343_s29  }
  0x13   :  { %s344_s7 = smov [#allocation2]   ;;  %s345_s9 = smov [#allocation7]  }
  0x14   :  { %s19_s8 = sshll.u32 %s344_s7, 4  ;;  %s42_s10 = sshll.u32 %s345_s9, 4  ;;  %s20_s8 = int_to_ptr.vmem [resolvable:$true] %s19_s8  ;;  %s43_s10 = int_to_ptr.vmem [resolvable:$true] %s42_s10 }
  0x15   :  { %s269_s13 = scalar_lea.hbm %s439_s0, 128 }
  0x16   :  { %p270_p8 = scmp.ne.s32.totalorder %s439_s0, %s269_s13  ;;  %p273_p9 = scmp.lt.u32.totalorder %s269_s13, %s439_s0 }
  0x18   :  { %p275_p10 = pnand %p273_p9, %p270_p8 }
  0x1a   :  { %278 = shalt.err (!%p275_p10)
}
  0x1b   :  { %s279_s1 = scalar_lea.vmem %s20_s8, 128  ;;  %p284_p12 = scmp.lt.s32.totalorder %s20_s8, %s20_s8 }
  0x1c   :  { %p280_p11 = scmp.ne.s32.totalorder %s20_s8, %s279_s1  ;;  %p285_p13 = scmp.lt.s32.totalorder %s279_s1, %s279_s1 }
  0x1e   :  { %p286_p0 = por %p285_p13, %p284_p12 }
  0x20   :  { %p287_p1 = pnand %p286_p0, %p280_p11 }
  0x22   :  { %290 = shalt.err (!%p287_p1)
}
  0x23   :  { %22 = dma.hbm_to_vmem [thread:$0]  %s439_s0, 128, %s20_s8, [#allocation3]  }
  0x24   :  { %s291_s22 = scalar_lea.hbm %s442_s3, 256 }
  0x25   :  { %p292_p2 = scmp.ne.s32.totalorder %s442_s3, %s291_s22  ;;  %p295_p3 = scmp.lt.u32.totalorder %s291_s22, %s442_s3 }
  0x27   :  { %p297_p4 = pnand %p295_p3, %p292_p2 }
  0x29   :  { %300 = shalt.err (!%p297_p4)
}
  0x2a   :  { %s301_s27 = scalar_lea.vmem %s43_s10, 256  ;;  %p306_p6 = scmp.lt.s32.totalorder %s43_s10, %s43_s10 }
  0x2b   :  { %p302_p5 = scmp.ne.s32.totalorder %s43_s10, %s301_s27  ;;  %p307_p7 = scmp.lt.s32.totalorder %s301_s27, %s301_s27 }
  0x2d   :  { %p308_p8 = por %p307_p7, %p306_p6 }
  0x2f   :  { %p309_p9 = pnand %p308_p8, %p302_p5 }
  0x31   :  { %312 = shalt.err (!%p309_p9)
}
  0x32   :  { %48 = dma.hbm_to_vmem [thread:$0]  %s442_s3, 256, %s43_s10, [#allocation6], %s342_s28, %s342_s28, %s343_s29  }
  0x33   :  { %335 = dma.done.wait [#allocation3], 128  }
  0x34   :  { %336 = vsyncadd [#allocation3], 4294967168 }
  0x35   :  { %337 = dma.done.wait [#allocation6], 384  }
  0x36   :  { %338 = vsyncadd [#allocation6], 4294966912  ;;  %v346_v0 = vmov 0.0   ;;  %vm347_vm0 = vmmov 0   ;;  %v244_v1 = vld [vmem:[#allocation5] sm:$0xff]   ;;  %v61_v2 = vld [vmem:[#allocation2] sm:$0xff] }
  0x37   :  { %222 = vmatprep.subr.bf16.mxu0 %v346_v0  ;;  %224 = vmatprep.mubr.msk.bf16.mxu0 %vm347_vm0, %v346_v0  ;;  %vm78_vm1 = vcmask 130048   ;;  %v65_v3 = vpack.c.bf16 %v61_v2, %v61_v2  ;;  %v245_v4 = vld [vmem:[#allocation7] sm:$0xff]   ;;  %v246_v5 = vld [vmem:[#allocation7 + $0x8] sm:$0xff]   ;;  %v210_v6 = vld [vmem:[%s441_s2] ss:$0 sm:$0xff]  ;;  %vm147_vm2 = vcmask 261120  }
  0x38   :  { %228 = vmatprep.subr.bf16.mxu1 %v346_v0  ;;  %232 = vmatprep.mubr.msk.bf16.mxu1 %vm347_vm0, %v346_v0  ;;  %v213_v14 = vld [vmem:[%s443_s4] ss:$0 sm:$0xff]  ;;  %s348_s7 = smov [#allocation8]   ;;  %vm192_vm3 = vcmask 257024  }
  0x39   :  { %223 = vmatpush3.bf16.msra.mxu0 %v244_v1  ;;  %229 = vmatpush3.bf16.msra.mxu1 %v245_v4  ;;  %s200_s8 = sshll.u32 %s348_s7, 4  ;;  %s201_s8 = int_to_ptr.vmem [resolvable:$true] %s200_s8 }
  0x3a   :  { %230 = vmatprep.subr.bf16.mxu1 %v346_v0  ;;  %s313_s2 = scalar_lea.vmem %s201_s8, 64  ;;  %p318_p11 = scmp.lt.s32.totalorder %s201_s8, %s201_s8 }
  0x3b   :  { %p314_p10 = scmp.ne.s32.totalorder %s201_s8, %s313_s2  ;;  %p319_p12 = scmp.lt.s32.totalorder %s313_s2, %s313_s2 }
  0x3c   :  { %225 = vmatmul.mubr.msk.bf16.vlgmr.msra.gmra.mrb[0].mxu0 %vm78_vm1, %v65_v3 }
  0x3d   :  { %231 = vmatpush3.bf16.msra.mxu1 %v246_v5  ;;  %p320_p13 = por %p319_p12, %p318_p11 }
  0x3f   :  { %p321_p0 = pnand %p320_p13, %p314_p10 }
 0x10f   :  { %v116_v7 = vpop.f32.mrb[0].mxu0 }
 0x110   :  { %v117_v8 = vadd.f32 %v210_v6, %v116_v7  ;;  %v226_v9 = vpop.f32.mrb[1].mxu0 }
 0x111   :  { %v119_v10 = vpop.f32.mrb[2].mxu0 }
 0x112   :  { %v122_v11 = vmax.f32 %v117_v8, 0.0  ;;  %v227_v12 = vpop.f32.mrb[3].mxu0 }
 0x114   :  { %v128_v13 = vpack.c.bf16 %v122_v11, %v122_v11 }
 0x116   :  { %233 = vmatmul.mubr.msk.bf16.vlgmr.msra.gmra.mrb[0].mxu1 %vm147_vm2, %v128_v13 }
 0x1e9   :  { %v185_v15 = vpop.f32.mrb[0].mxu1 }
 0x1ea   :  { %v186_v16 = vadd.f32 %v213_v14, %v185_v15  ;;  %v234_v17 = vpop.f32.mrb[1].mxu1 }
 0x1eb   :  { %v188_v18 = vpop.f32.mrb[2].mxu1 }
 0x1ec   :  { %v191_v19 = vpack.c.bf16 %v186_v16, %v186_v16  ;;  %v235_v20 = vpop.f32.mrb[3].mxu1 }
 0x1ee   :  { %193 = vst.msk [vmem:[#allocation8] sm:$0xf] %vm192_vm3, %v191_v19 }
 0x1ef   :  { %324 = shalt.err (!%p321_p0)
}
 0x1f0   :  { %s325_s10 = scalar_lea.hbm %s444_s5, 64 }
 0x1f1   :  { %p326_p1 = scmp.ne.s32.totalorder %s444_s5, %s325_s10  ;;  %p329_p2 = scmp.lt.u32.totalorder %s325_s10, %s444_s5 }
 0x1f3   :  { %p331_p3 = pnand %p329_p2, %p326_p1 }
 0x1f5   :  { %334 = shalt.err (!%p331_p3)
}
 0x1f6   :  { %203 = dma.vmem_to_hbm [thread:$0]  %s201_s8, 64, %s444_s5, [#allocation4]  }
 0x1f7   :  { %339 = dma.done.wait [#allocation4], 64  }
 0x1f8   :  { %340 = vsyncadd [#allocation4], 4294967232 }
 0x1f9   :  { %207 = vsyncpa [#allocation3], 1 }
 0x1fa   :  { %208 = vsyncpa [#allocation6], 1 }
 0x1fb   :  { %209 = vsyncpa [#allocation4], 1 }

</bundles_post_ra>
